<compile_context>
chip_gen: v5e
topology: v5e:2x2
jax: 0.10.0
libtpu: 0.0.40
codegen_flags: <defaults>
</compile_context>

<pallas_src>
import numpy as np

import jax
import jax.numpy as jnp
from jax import lax
from jax.experimental import pallas as pl
from jax.experimental.pallas import tpu as pltpu


def _const_spec(shape):
    """BlockSpec for a grid-invariant operand; single-buffered when supported."""
    nd = len(shape)
    idx = lambda b, _n=nd: (0,) * _n
    try:
        # Block index never changes -> double buffering only wastes VMEM.
        return pl.BlockSpec(shape, idx, pipeline_mode=pl.Buffered(1))
    except Exception:  # older jax without pipeline_mode / Buffered(1)
        return pl.BlockSpec(shape, idx)


def _vmem_limit_bytes():
    # ~100 MiB on v5e/v6e (128 MiB physical); stays well under v7x's 64 MiB.
    try:
        phys = int(pltpu.get_tpu_info().vmem_capacity_bytes)
    except Exception:
        phys = 64 * 1024 * 1024
    return int(min(100 * 1024 * 1024, phys * 7 // 8))


# ----------------------------------------------------------------------------
# Encoder: 1x1 conv (pointwise matmul, bf16) + ReLU + exact adaptive avg pool
# expressed as a second matmul. No in-kernel transposes; lane-dense stores.
# ----------------------------------------------------------------------------
def _adaptive_pool_matrix(H, W, E):
    """(E*E, H*W) matrix implementing AdaptiveAvgPool2d((E, E)) exactly."""
    def axis_mat(n, e):
        starts = (np.arange(e) * n) // e
        ends = -((-(np.arange(1, e + 1) * n)) // e)          # ceil((i+1)*n/e)
        m = np.zeros((e, n), np.float32)
        for i in range(e):
            m[i, starts[i]:ends[i]] = 1.0 / float(ends[i] - starts[i])
        return m

    ph = axis_mat(H, E)                                       # (E, H)
    pw = axis_mat(W, E)                                       # (E, W)
    pm = np.einsum("ih,jw->ijhw", ph, pw).reshape(E * E, H * W)
    return jnp.asarray(pm)                                    # (O, HW)


def encoder_kernel(x_ref, w_ref, b_ref, pool_ref, o_ref):
    # x_ref: (eb, HW, Cp) bf16   w_ref: (Cp, D) bf16   b_ref: (1, D) f32
    # pool_ref: (O, HW) f32      o_ref: (eb, O, D) bf16
    eb, HW, Cp = x_ref.shape
    D = w_ref.shape[1]

    x = x_ref[...].reshape(eb * HW, Cp)                       # fold batch into M
    feat = jnp.dot(x, w_ref[...], preferred_element_type=jnp.float32)
    feat = jnp.maximum(feat + b_ref[...], 0.0)                # conv + ReLU (f32)
    feat = feat.reshape(eb, HW, D)

    pool = pool_ref[...]                                      # (O, HW)
    for bi in range(eb):                                      # small static loop
        pooled = jnp.dot(pool, feat[bi], preferred_element_type=jnp.float32)
        o_ref[bi] = pooled.astype(o_ref.dtype)                # lane-dense (O, D)


def encoder_forward(images_nchw, w_conv, b_conv, enc_size, *, block_b=None):
    B, Cin, H, W = images_nchw.shape
    D = w_conv.shape[1]
    HW = H * W
    O = enc_size * enc_size
    eb = B if block_b is None else block_b
    assert B % eb == 0

    # NCHW -> NHWC-flat in the wrapper (glue); kernel stays matmul-only.
    Cp = max(8, -(-Cin // 8) * 8)
    x = images_nchw.astype(jnp.float32).transpose(0, 2, 3, 1).reshape(B, HW, Cin)
    x = jnp.pad(x, ((0, 0), (0, 0), (0, Cp - Cin))).astype(jnp.bfloat16)
    w = jnp.pad(w_conv.astype(jnp.float32),
                ((0, Cp - Cin), (0, 0))).astype(jnp.bfloat16)         # (Cp, D)
    b_row = b_conv.astype(jnp.float32).reshape(1, D)
    pool_mat = _adaptive_pool_matrix(H, W, enc_size)                   # (O, HW)

    grid_spec = pltpu.PrefetchScalarGridSpec(
        num_scalar_prefetch=0,
        grid=(B // eb,),
        in_specs=[
            pl.BlockSpec((eb, HW, Cp), lambda bb: (bb, 0, 0)),
            _const_spec((Cp, D)),
            _const_spec((1, D)),
            _const_spec((O, HW)),
        ],
        out_specs=pl.BlockSpec((eb, O, D), lambda bb: (bb, 0, 0)),
    )
    # Output (B, P, D) == features.permute(0, 2, 3, 1).view(B, -1, D), bf16.
    return pl.pallas_call(
        encoder_kernel,
        grid_spec=grid_spec,
        out_shape=jax.ShapeDtypeStruct((B, O, D), jnp.bfloat16),
        compiler_params=pltpu.CompilerParams(
            dimension_semantics=("parallel",),
            vmem_limit_bytes=_vmem_limit_bytes()),
    )(x, w, b_row, pool_mat)


# ----------------------------------------------------------------------------
# Decoder: one grid step per batch tile; all T timesteps fused in-kernel.
#   - hoisted: encoder attention projection, init_h / init_c, all weight loads,
#     pre-summed LSTM bias
#   - per step: attention (MXU) + softmax (EUP reciprocal) + gated weighted
#     encoding (MXU), LSTMCell (PyTorch i/f/g/o gate order), fc to vocab
# ----------------------------------------------------------------------------
def decoder_kernel(enc_ref, emb_ref,
                   wih_ref, bih_ref, wic_ref, bic_ref,
                   wea_ref, bea_ref, wda_ref, bda_ref, wfa_ref, bfa_ref,
                   wfb_ref, bfb_ref,
                   wxe_ref, wxa_ref, bxi_ref, whh_ref, bhh_ref,
                   wfc_ref, bfc_ref,
                   pred_ref, alpha_ref):
    bB, P, De = enc_ref.shape
    T = pred_ref.shape[1]
    E = emb_ref.shape[2]
    A = wea_ref.shape[1]
    Hd = whh_ref.shape[0]
    Pa = alpha_ref.shape[2]                                  # lane-padded pixels
    f32, bf16 = jnp.float32, jnp.bfloat16

    enc = enc_ref[...]                                       # (bB, P, De) bf16

    # --- hoisted, timestep-invariant work ---------------------------------
    att1 = (jnp.dot(enc.reshape(bB * P, De), wea_ref[...],
                    preferred_element_type=f32)
            + bea_ref[...]).reshape(bB, P, A)                # (bB, P, A)

    mean_enc = jnp.mean(enc.astype(f32), axis=1)             # (bB, De) f32
    h0 = jnp.dot(mean_enc, wih_ref[...], preferred_element_type=f32) + bih_ref[...]
    c0 = jnp.dot(mean_enc, wic_ref[...], preferred_element_type=f32) + bic_ref[...]

    # Weight/bias loads hoisted: unroll=True does not CSE per-step loads.
    wda = wda_ref[...]; bda = bda_ref[...]
    wfa = wfa_ref[...]; bfa = bfa_ref[...]                   # (1, A), (1, 1) f32
    wfb = wfb_ref[...]; bfb = bfb_ref[...]
    wxe = wxe_ref[...]; wxa = wxa_ref[...]; whh = whh_ref[...]
    b_lstm = bxi_ref[...] + bhh_ref[...]                     # pre-summed (1, 4H)
    wfc = wfc_ref[...]; bfc = bfc_ref[...]
    zpad = jnp.zeros((bB, Pa - P), f32) if Pa > P else None  # hoisted constant

    def step(t, carry):
        h, c = carry
        hb = h.astype(bf16)

        # --- attention -----------------------------------------------------
        att2 = jnp.dot(hb, wda, preferred_element_type=f32) + bda     # (bB, A)
        e = jnp.maximum(att1 + att2[:, None, :], 0.0)                 # (bB, P, A)
        att = jnp.sum(e * wfa, axis=-1) + bfa                         # (bB, P)
        att_max = jnp.max(att, axis=1, keepdims=True)
        expo = jnp.exp(att - att_max)
        inv_den = pl.reciprocal(jnp.sum(expo, axis=1, keepdims=True), approx=True)
        alpha = expo * inv_den                                        # softmax
        # attention-weighted encoding on the MXU (batched matvec)
        awe = jnp.einsum("bqp,bpd->bqd",
                         alpha.astype(bf16).reshape(bB, 1, P), enc,
                         preferred_element_type=f32).reshape(bB, De)

        # --- gate ------------------------------------------------------------
        gate = jax.nn.sigmoid(jnp.dot(hb, wfb, preferred_element_type=f32) + bfb)
        awe = gate * awe

        # --- LSTMCell (input = concat([emb_t, awe]); weights pre-split) ------
        emb_t = emb_ref[:, pl.ds(t, 1), :].reshape(bB, E)             # bf16
        gates = (jnp.dot(emb_t, wxe, preferred_element_type=f32)
                 + jnp.dot(awe.astype(bf16), wxa, preferred_element_type=f32)
                 + jnp.dot(hb, whh, preferred_element_type=f32)
                 + b_lstm)                                            # (bB, 4H)
        i_g = jax.nn.sigmoid(gates[:, 0:Hd])
        f_g = jax.nn.sigmoid(gates[:, Hd:2 * Hd])
        g_g = jnp.tanh(gates[:, 2 * Hd:3 * Hd])
        o_g = jax.nn.sigmoid(gates[:, 3 * Hd:4 * Hd])
        c_new = f_g * c + i_g * g_g
        h_new = o_g * jnp.tanh(c_new)

        # --- fc (dropout = identity in eval) ---------------------------------
        preds = jnp.dot(h_new.astype(bf16), wfc, preferred_element_type=f32) + bfc

        pred_ref[:, pl.ds(t, 1), :] = preds[:, None, :]               # lane-dense
        alpha_store = (jnp.concatenate([alpha, zpad], axis=-1)
                       if Pa > P else alpha)                          # lane-dense
        alpha_ref[:, pl.ds(t, 1), :] = alpha_store[:, None, :]
        return (h_new, c_new)

    # Full unroll for short captions; partial unroll avoids the spill cliff at
    # realistic caption lengths.
    lax.fori_loop(0, T, step, (h0, c0), unroll=(True if T <= 16 else 4))


def decoder_forward(encoder_out, captions, params, *, block_b=None):
    B, P, De = encoder_out.shape
    V, E = params["emb_table"].shape
    T = captions.shape[1] - 1                                # decode_length
    bb = B if block_b is None else block_b                   # fill the MXU M dim
    assert B % bb == 0
    Pa = max(128, -(-P // 128) * 128)                        # lane-dense alphas

    # Embedding lookup (glue); stored bf16 to halve HBM/VMEM traffic.
    emb = params["emb_table"][captions[:, :T]].astype(jnp.bfloat16)   # (B, T, E)

    bf = lambda w: w.astype(jnp.bfloat16)
    weights = [
        params["w_init_h"], params["b_init_h"].reshape(1, -1),
        params["w_init_c"], params["b_init_c"].reshape(1, -1),
        bf(params["w_enc_att"]), params["b_enc_att"].reshape(1, -1),
        bf(params["w_dec_att"]), params["b_dec_att"].reshape(1, -1),
        params["w_full_att"].reshape(1, -1), params["b_full_att"].reshape(1, 1),
        bf(params["w_f_beta"]), params["b_f_beta"].reshape(1, -1),
        bf(params["w_ih_e"]), bf(params["w_ih_a"]), params["b_ih"].reshape(1, -1),
        bf(params["w_hh"]), params["b_hh"].reshape(1, -1),
        bf(params["w_fc"]), params["b_fc"].reshape(1, -1),
    ]

    grid_spec = pltpu.PrefetchScalarGridSpec(
        num_scalar_prefetch=0,
        grid=(B // bb,),
        in_specs=[
            pl.BlockSpec((bb, P, De), lambda b: (b, 0, 0)),
            pl.BlockSpec((bb, T, E), lambda b: (b, 0, 0)),
            *[_const_spec(tuple(w.shape)) for w in weights],
        ],
        out_specs=[
            pl.BlockSpec((bb, T, V), lambda b: (b, 0, 0)),
            pl.BlockSpec((bb, T, Pa), lambda b: (b, 0, 0)),
        ],
    )

    predictions, alphas_pad = pl.pallas_call(
        decoder_kernel,
        grid_spec=grid_spec,
        out_shape=(jax.ShapeDtypeStruct((B, T, V), jnp.float32),
                   jax.ShapeDtypeStruct((B, T, Pa), jnp.float32)),
        compiler_params=pltpu.CompilerParams(
            dimension_semantics=("parallel",),       # batch-parallel (2 TCs on v7x)
            vmem_limit_bytes=_vmem_limit_bytes()),
    )(encoder_out, emb, *weights)
    return predictions, alphas_pad[:, :, :P]


def cnn_to_rnn_forward(images, captions, params, enc_size):
    encoder_out = encoder_forward(images, params["w_conv"], params["b_conv"], enc_size)
    return decoder_forward(encoder_out, captions, params)


# ----------------------------------------------------------------------------
# Deterministic parameter init (shapes from the module __init__, scaled down).
# Weights are stored already transposed to (in_features, out_features).
# ----------------------------------------------------------------------------
def make_params(key, *, cin, enc_dim, att_dim, dec_dim, emb_dim, vocab_size):
    ks = jax.random.split(key, 24)
    u = lambda k, shape, a=0.1: jax.random.uniform(k, shape, jnp.float32, -a, a)
    H4 = 4 * dec_dim
    return {
        "w_conv": u(ks[0], (cin, enc_dim)),
        "b_conv": u(ks[1], (enc_dim,)),
        "emb_table": u(ks[2], (vocab_size, emb_dim)),          # uniform(-0.1, 0.1)
        "w_init_h": u(ks[3], (enc_dim, dec_dim)),
        "b_init_h": u(ks[4], (dec_dim,)),
        "w_init_c": u(ks[5], (enc_dim, dec_dim)),
        "b_init_c": u(ks[6], (dec_dim,)),
        "w_enc_att": u(ks[7], (enc_dim, att_dim)),
        "b_enc_att": u(ks[8], (att_dim,)),
        "w_dec_att": u(ks[9], (dec_dim, att_dim)),
        "b_dec_att": u(ks[10], (att_dim,)),
        "w_full_att": u(ks[11], (att_dim,)),
        "b_full_att": u(ks[12], (1,)),
        "w_f_beta": u(ks[13], (dec_dim, enc_dim)),
        "b_f_beta": u(ks[14], (enc_dim,)),
        "w_ih_e": u(ks[15], (emb_dim, H4)),
        "w_ih_a": u(ks[16], (enc_dim, H4)),
        "b_ih": u(ks[17], (H4,)),
        "w_hh": u(ks[18], (dec_dim, H4)),
        "b_hh": u(ks[19], (H4,)),
        "w_fc": u(ks[20], (dec_dim, vocab_size)),              # uniform(-0.1, 0.1)
        "b_fc": jnp.zeros((vocab_size,), jnp.float32),         # fc bias = 0
    }


if __name__ == "__main__":
    # Small, module-consistent shapes; dims are multiples of 128 so LSTM gate
    # slices and prediction/alpha stores are lane-aligned / lane-dense.
    B, CIN, IMG = 2, 3, 16
    ENC_SIZE = 4                      # encoded_image_size -> num_pixels = 16
    ENC_DIM, ATT_DIM, DEC_DIM, EMB_DIM = 128, 128, 128, 128
    VOCAB = 256
    CAP_LEN = 8                       # decode_length = 7

    key = jax.random.PRNGKey(0)
    k_img, k_cap, k_par = jax.random.split(key, 3)
    images = jax.random.normal(k_img, (B, CIN, IMG, IMG), jnp.float32)   # NCHW
    captions = jax.random.randint(k_cap, (B, CAP_LEN), 0, VOCAB, jnp.int32)
    params = make_params(k_par, cin=CIN, enc_dim=ENC_DIM, att_dim=ATT_DIM,
                         dec_dim=DEC_DIM, emb_dim=EMB_DIM, vocab_size=VOCAB)

    predictions, alphas = cnn_to_rnn_forward(images, captions, params, ENC_SIZE)
    jax.block_until_ready((predictions, alphas))
    assert predictions.shape == (B, CAP_LEN - 1, VOCAB)
    assert alphas.shape == (B, CAP_LEN - 1, ENC_SIZE * ENC_SIZE)
    print("KERNEL_OK")
</pallas_src>

<mosaic_0001>
module attributes {stable_mosaic.version = 11 : i64} {
  func.func @encoder_kernel(%arg0: i32, %arg1: memref<2x256x8xbf16, #tpu.memory_space<vmem>>, %arg2: memref<8x128xbf16, #tpu.memory_space<vmem>>, %arg3: memref<1x128xf32, #tpu.memory_space<vmem>>, %arg4: memref<16x256xf32, #tpu.memory_space<vmem>>, %arg5: memref<2x16x128xbf16, #tpu.memory_space<vmem>>) attributes {dimension_semantics = [#tpu.dimension_semantics<parallel>], iteration_bounds = array<i64: 1>, scalar_prefetch = 0 : i64, scratch_operands = 0 : i64, tpu.core_type = #tpu.core_type<tc>, window_params = [{transform_indices = @transform_0, window_bounds = array<i64: 2, 256, 8>}, {pipeline_mode = #tpu.pipeline_mode<synchronous>, transform_indices = @transform_1, window_bounds = array<i64: 8, 128>}, {pipeline_mode = #tpu.pipeline_mode<synchronous>, transform_indices = @transform_2, window_bounds = array<i64: 1, 128>}, {pipeline_mode = #tpu.pipeline_mode<synchronous>, transform_indices = @transform_3, window_bounds = array<i64: 16, 256>}, {transform_indices = @transform_4, window_bounds = array<i64: 2, 16, 128>}]} {
    %c0 = arith.constant 0 : index
    %c0_0 = arith.constant 0 : index
    %c0_1 = arith.constant 0 : index
    %0 = vector.load %arg1[%c0, %c0_0, %c0_1] : memref<2x256x8xbf16, #tpu.memory_space<vmem>>, vector<2x256x8xbf16>
    %1 = vector.shape_cast %0 : vector<2x256x8xbf16> to vector<512x8xbf16>
    %c0_2 = arith.constant 0 : index
    %c0_3 = arith.constant 0 : index
    %2 = vector.load %arg2[%c0_2, %c0_3] : memref<8x128xbf16, #tpu.memory_space<vmem>>, vector<8x128xbf16>
    %cst = arith.constant dense<0.000000e+00> : vector<512x128xf32>
    %3 = tpu.matmul %1, %2, %cst {dimension_numbers = #tpu.dot_dimension_numbers<[1], [0], [0], [1], [0, 0, 1, 1], [], []>} : vector<512x8xbf16>, vector<8x128xbf16>, vector<512x128xf32> -> vector<512x128xf32>
    %c0_4 = arith.constant 0 : index
    %c0_5 = arith.constant 0 : index
    %4 = vector.load %arg3[%c0_4, %c0_5] : memref<1x128xf32, #tpu.memory_space<vmem>>, vector<1x128xf32>
    %5 = vector.broadcast %4 : vector<1x128xf32> to vector<512x128xf32>
    %6 = arith.addf %3, %5 : vector<512x128xf32>
    %cst_6 = arith.constant 0.000000e+00 : f32
    %7 = vector.broadcast %cst_6 : f32 to vector<512x128xf32>
    %8 = arith.maximumf %6, %7 : vector<512x128xf32>
    %9 = vector.shape_cast %8 : vector<512x128xf32> to vector<2x256x128xf32>
    %c0_7 = arith.constant 0 : index
    %c0_8 = arith.constant 0 : index
    %10 = vector.load %arg4[%c0_7, %c0_8] : memref<16x256xf32, #tpu.memory_space<vmem>>, vector<16x256xf32>
    %11 = vector.extract_strided_slice %9 {offsets = [0, 0, 0], sizes = [1, 256, 128], strides = [1, 1, 1]} : vector<2x256x128xf32> to vector<1x256x128xf32>
    %12 = vector.shape_cast %11 : vector<1x256x128xf32> to vector<256x128xf32>
    %cst_9 = arith.constant dense<0.000000e+00> : vector<16x128xf32>
    %13 = tpu.matmul %10, %12, %cst_9 {dimension_numbers = #tpu.dot_dimension_numbers<[1], [0], [0], [1], [0, 0, 1, 1], [], []>} : vector<16x256xf32>, vector<256x128xf32>, vector<16x128xf32> -> vector<16x128xf32>
    %14 = arith.truncf %13 : vector<16x128xf32> to vector<16x128xbf16>
    %c0_10 = arith.constant 0 : index
    %c0_11 = arith.constant 0 : index
    %c0_12 = arith.constant 0 : index
    %15 = vector.load %arg5[%c0_10, %c0_11, %c0_12] : memref<2x16x128xbf16, #tpu.memory_space<vmem>>, vector<1x16x128xbf16>
    %16 = vector.shape_cast %15 : vector<1x16x128xbf16> to vector<16x128xbf16>
    %17 = vector.shape_cast %14 : vector<16x128xbf16> to vector<1x16x128xbf16>
    tpu.vector_store %arg5[%c0_10, %c0_11, %c0_12], %17 {strides = array<i32>} : memref<2x16x128xbf16, #tpu.memory_space<vmem>>, vector<1x16x128xbf16>,
    %18 = vector.extract_strided_slice %9 {offsets = [1, 0, 0], sizes = [1, 256, 128], strides = [1, 1, 1]} : vector<2x256x128xf32> to vector<1x256x128xf32>
    %19 = vector.shape_cast %18 : vector<1x256x128xf32> to vector<256x128xf32>
    %cst_13 = arith.constant dense<0.000000e+00> : vector<16x128xf32>
    %20 = tpu.matmul %10, %19, %cst_13 {dimension_numbers = #tpu.dot_dimension_numbers<[1], [0], [0], [1], [0, 0, 1, 1], [], []>} : vector<16x256xf32>, vector<256x128xf32>, vector<16x128xf32> -> vector<16x128xf32>
    %21 = arith.truncf %20 : vector<16x128xf32> to vector<16x128xbf16>
    %c1 = arith.constant 1 : index
    %c0_14 = arith.constant 0 : index
    %c0_15 = arith.constant 0 : index
    %22 = vector.load %arg5[%c1, %c0_14, %c0_15] : memref<2x16x128xbf16, #tpu.memory_space<vmem>>, vector<1x16x128xbf16>
    %23 = vector.shape_cast %22 : vector<1x16x128xbf16> to vector<16x128xbf16>
    %24 = vector.shape_cast %21 : vector<16x128xbf16> to vector<1x16x128xbf16>
    tpu.vector_store %arg5[%c1, %c0_14, %c0_15], %24 {strides = array<i32>} : memref<2x16x128xbf16, #tpu.memory_space<vmem>>, vector<1x16x128xbf16>,
    return
  }
  func.func @transform_0(%arg0: i32) -> (i32, i32, i32) {
    %c0_i32 = arith.constant 0 : i32
    %c0_i32_0 = arith.constant 0 : i32
    %c0_i32_1 = arith.constant 0 : i32
    return %arg0, %c0_i32, %c0_i32_0 : i32, i32, i32
  }
  func.func @transform_1(%arg0: i32) -> (i32, i32) {
    %c0_i32 = arith.constant 0 : i32
    %c0_i32_0 = arith.constant 0 : i32
    %c0_i32_1 = arith.constant 0 : i32
    return %c0_i32, %c0_i32_0 : i32, i32
  }
  func.func @transform_2(%arg0: i32) -> (i32, i32) {
    %c0_i32 = arith.constant 0 : i32
    %c0_i32_0 = arith.constant 0 : i32
    %c0_i32_1 = arith.constant 0 : i32
    return %c0_i32, %c0_i32_0 : i32, i32
  }
  func.func @transform_3(%arg0: i32) -> (i32, i32) {
    %c0_i32 = arith.constant 0 : i32
    %c0_i32_0 = arith.constant 0 : i32
    %c0_i32_1 = arith.constant 0 : i32
    return %c0_i32, %c0_i32_0 : i32, i32
  }
  func.func @transform_4(%arg0: i32) -> (i32, i32, i32) {
    %c0_i32 = arith.constant 0 : i32
    %c0_i32_0 = arith.constant 0 : i32
    %c0_i32_1 = arith.constant 0 : i32
    return %arg0, %c0_i32, %c0_i32_0 : i32, i32, i32
  }
}

</mosaic_0001>

<bundles_post_ra>
// kernel: tpu_custom_call.1
= control target key start
LH: loop header
LB: loop body
LE: loop exit
PB: predicated region body
PF: predicated region fallthrough
CT: control target
= control target key end

     0   :  { %vm345_vm0 = vcmask 1043456   ;;  %vm248_vm1 = vcmask 64512   ;;  %s1299_s0 = inlined_call_operand.vmem [shape: bf16[2,256,8], index: 0, kind: input, shape index: {}]   ;;  %s1300_s1 = inlined_call_operand.vmem [shape: bf16[8,128], index: 1, kind: input, shape index: {}]   ;;  %s1301_s2 = inlined_call_operand.vmem [shape: f32[1,128], index: 2, kind: input, shape index: {}]   ;;  %s1302_s3 = inlined_call_operand.vmem [shape: f32[16,256], index: 3, kind: input, shape index: {}]   ;;  %s1303_s4 = inlined_call_operand.hbm [shape: bf16[2,16,128], index: 4, kind: output, shape index: {}]  }
   0x1   :  { %v83_v0 = vld [vmem:[%s1300_s1] sm:$0xf]  ;;  %v879_v3 = vld [vmem:[%s1299_s0 + $0x70] sm:$0xff]  ;;  %v888_v4 = vld [vmem:[%s1299_s0 + $0xb8] sm:$0xff] }
   0x2   :  { %v347_v1 = vsel %vm345_vm0, %v83_v0, 0  ;;  %v865_v2 = vld [vmem:[%s1299_s0] sm:$0xff] }
   0x3   :  { %356 = vmatpush.bf16.msra.mxu0 %v347_v1  ;;  %908 = vmatpush.bf16.msra.mxu2 %v347_v1 }
   0x4   :  { %909 = vmatpush.bf16.msra.mxu3 %v347_v1  ;;  %907 = vmatpush.bf16.msra.mxu1 %v347_v1 }
   0x5   :  { %9 = vsyncpa [#allocation3], 0  ;;  %v866_v5 = vld [vmem:[%s1299_s0 + $0x8] sm:$0xff]  ;;  %v880_v6 = vld [vmem:[%s1299_s0 + $0x78] sm:$0xff]  ;;  %s940_s8 = smov [#allocation2]   ;;  %s693_s12 = sshll.u32 %s1303_s4, 4  ;;  %s694_s12 = int_to_ptr.hbm [resolvable:$true] %s693_s12 }
   0x6   :  { %833 = vmatmul.msk.bf16.vlgmr.msra.gmra.mxu0 %vm248_vm1, %v865_v2  ;;  %847 = vmatmul.msk.bf16.vlgmr.msra.gmra.mxu2 %vm248_vm1, %v879_v3  ;;  %v889_v7 = vld [vmem:[%s1299_s0 + $0xc0] sm:$0xff]  ;;  %v867_v8 = vld [vmem:[%s1299_s0 + $0x10] sm:$0xff]  ;;  %v890_v10 = vld [vmem:[%s1299_s0 + $0xc8] sm:$0xff]  ;;  %s691_s9 = sshll.u32 %s940_s8, 4  ;;  %s942_s13 = smov 4   ;;  %s692_s9 = int_to_ptr.vmem [resolvable:$true] %s691_s9 }
   0x7   :  { %856 = vmatmul.msk.bf16.vlgmr.msra.gmra.mxu3 %vm248_vm1, %v888_v4  ;;  %v881_v9 = vld [vmem:[%s1299_s0 + $0x80] sm:$0xff]  ;;  %v876_v11 = vld [vmem:[%s1299_s0 + $0x58] sm:$0xff]  ;;  %v882_v13 = vld [vmem:[%s1299_s0 + $0x88] sm:$0xff] }
   0x8   :  { %844 = vmatmul.msk.bf16.vlgmr.msra.gmra.mxu1 %vm248_vm1, %v876_v11  ;;  %v868_v12 = vld [vmem:[%s1299_s0 + $0x18] sm:$0xff]  ;;  %v891_v14 = vld [vmem:[%s1299_s0 + $0xd0] sm:$0xff]  ;;  %v877_v15 = vld [vmem:[%s1299_s0 + $0x60] sm:$0xff] }
   0x9   :  { %v869_v16 = vld [vmem:[%s1299_s0 + $0x20] sm:$0xff]  ;;  %v883_v17 = vld [vmem:[%s1299_s0 + $0x90] sm:$0xff]  ;;  %v892_v18 = vld [vmem:[%s1299_s0 + $0xd8] sm:$0xff] }
   0xa   :  { %v878_v19 = vld [vmem:[%s1299_s0 + $0x68] sm:$0xff]  ;;  %v884_v21 = vld [vmem:[%s1299_s0 + $0x98] sm:$0xff]  ;;  %v893_v22 = vld [vmem:[%s1299_s0 + $0xe0] sm:$0xff] }
   0xb   :  { %v870_v20 = vld [vmem:[%s1299_s0 + $0x28] sm:$0xff]  ;;  %v871_v23 = vld [vmem:[%s1299_s0 + $0x30] sm:$0xff]  ;;  %v885_v24 = vld [vmem:[%s1299_s0 + $0xa0] sm:$0xff] }
   0xc   :  { %v894_v25 = vld [vmem:[%s1299_s0 + $0xe8] sm:$0xff]  ;;  %v872_v26 = vld [vmem:[%s1299_s0 + $0x38] sm:$0xff]  ;;  %v895_v28 = vld [vmem:[%s1299_s0 + $0xf0] sm:$0xff] }
   0xd   :  { %v886_v27 = vld [vmem:[%s1299_s0 + $0xa8] sm:$0xff]  ;;  %v873_v29 = vld [vmem:[%s1299_s0 + $0x40] sm:$0xff]  ;;  %v887_v30 = vld [vmem:[%s1299_s0 + $0xb0] sm:$0xff] }
   0xe   :  { %v896_v32 = vld [vmem:[%s1299_s0 + $0xf8] sm:$0xff]  ;;  %v1098_v36 = vld [vmem:[%s1301_s2] ss:$0 sm:$0xff]  ;;  %v874_v39 = vld [vmem:[%s1299_s0 + $0x48] sm:$0xff] }
   0xf   :  { %v875_v51 = vld [vmem:[%s1299_s0 + $0x50] sm:$0xff] }
  0x16   :  { %834 = vmatmul.msk.bf16.gmra.mxu0 %vm248_vm1, %v866_v5  ;;  %848 = vmatmul.msk.bf16.gmra.mxu2 %vm248_vm1, %v880_v6 }
  0x17   :  { %857 = vmatmul.msk.bf16.gmra.mxu3 %vm248_vm1, %v889_v7 }
  0x18   :  { %845 = vmatmul.msk.bf16.gmra.mxu1 %vm248_vm1, %v877_v15 }
  0x26   :  { %835 = vmatmul.msk.bf16.gmra.mxu0 %vm248_vm1, %v867_v8  ;;  %849 = vmatmul.msk.bf16.gmra.mxu2 %vm248_vm1, %v881_v9 }
  0x27   :  { %858 = vmatmul.msk.bf16.gmra.mxu3 %vm248_vm1, %v890_v10 }
  0x28   :  { %846 = vmatmul.msk.bf16.gmra.mxu1 %vm248_vm1, %v878_v19 }
  0x36   :  { %836 = vmatmul.msk.bf16.gmra.mxu0 %vm248_vm1, %v868_v12  ;;  %850 = vmatmul.msk.bf16.gmra.mxu2 %vm248_vm1, %v882_v13 }
  0x37   :  { %859 = vmatmul.msk.bf16.gmra.mxu3 %vm248_vm1, %v891_v14 }
  0x46   :  { %837 = vmatmul.msk.bf16.gmra.mxu0 %vm248_vm1, %v869_v16  ;;  %851 = vmatmul.msk.bf16.gmra.mxu2 %vm248_vm1, %v883_v17 }
  0x47   :  { %860 = vmatmul.msk.bf16.gmra.mxu3 %vm248_vm1, %v892_v18 }
  0x56   :  { %838 = vmatmul.msk.bf16.gmra.mxu0 %vm248_vm1, %v870_v20  ;;  %852 = vmatmul.msk.bf16.gmra.mxu2 %vm248_vm1, %v884_v21 }
  0x57   :  { %861 = vmatmul.msk.bf16.gmra.mxu3 %vm248_vm1, %v893_v22 }
  0x66   :  { %839 = vmatmul.msk.bf16.gmra.mxu0 %vm248_vm1, %v871_v23  ;;  %853 = vmatmul.msk.bf16.gmra.mxu2 %vm248_vm1, %v885_v24 }
  0x67   :  { %862 = vmatmul.msk.bf16.gmra.mxu3 %vm248_vm1, %v894_v25 }
  0x76   :  { %840 = vmatmul.msk.bf16.gmra.mxu0 %vm248_vm1, %v872_v26  ;;  %854 = vmatmul.msk.bf16.gmra.mxu2 %vm248_vm1, %v886_v27 }
  0x77   :  { %863 = vmatmul.msk.bf16.gmra.mxu3 %vm248_vm1, %v895_v28 }
  0x83   :  { %v1085_v31 = vpop.f32.mrf.mxu0 }
  0x85   :  { %v413_v57 = vpop.f32.mrf.mxu1 }
  0x86   :  { %841 = vmatmul.msk.bf16.gmra.mxu0 %vm248_vm1, %v873_v29  ;;  %855 = vmatmul.msk.bf16.gmra.mxu2 %vm248_vm1, %v887_v30  ;;  %v414_v28 = vadd.f32 %v1098_v36, %v413_v57 }
  0x87   :  { %864 = vmatmul.msk.bf16.gmra.mxu3 %vm248_vm1, %v896_v32 }
  0x88   :  { %v540_v32 = vmax.f32 %v414_v28, 0.0 }
  0x89   :  { %v428_v33 = vpop.f32.mrf.mxu2 }
  0x8a   :  { %v473_v34 = vpop.f32.mrf.mxu3  ;;  %v429_v58 = vadd.f32 %v1098_v36, %v428_v33 }
  0x8b   :  { %v1093_v35 = vpop.f32.mrf.mxu0  ;;  %v474_v38 = vadd.f32 %v1098_v36, %v473_v34 }
  0x8c   :  { %v546_v61 = vmax.f32 %v429_v58, 0.0 }
  0x8d   :  { %v564_v43 = vmax.f32 %v474_v38, 0.0  ;;  %v415_v0 = vpop.f32.mrf.mxu1 }
  0x8e   :  { %v416_v24 = vadd.f32 %v1098_v36, %v415_v0 }
  0x90   :  { %v541_v30 = vmax.f32 %v416_v24, 0.0 }
  0x91   :  { %v430_v37 = vpop.f32.mrf.mxu2 }
  0x92   :  { %v475_v40 = vpop.f32.mrf.mxu3  ;;  %v431_v54 = vadd.f32 %v1098_v36, %v430_v37 }
  0x93   :  { %v1104_v41 = vpop.f32.mrf.mxu0  ;;  %v476_v42 = vadd.f32 %v1098_v36, %v475_v40 }
  0x94   :  { %v547_v59 = vmax.f32 %v431_v54, 0.0 }
  0x95   :  { %v565_v44 = vmax.f32 %v476_v42, 0.0  ;;  %v418_v4 = vpop.f32.mrf.mxu1 }
  0x96   :  { %842 = vmatmul.msk.bf16.gmra.mxu0 %vm248_vm1, %v874_v39  ;;  %v419_v20 = vadd.f32 %v1098_v36, %v418_v4 }
  0x97   :  { %636 = vmatpush.msrb.mxu3 %v565_v44 }
  0x98   :  { %v542_v29 = vmax.f32 %v419_v20, 0.0 }
  0x99   :  { %v433_v45 = vpop.f32.mrf.mxu2  ;;  %637 = vmatpush.msrb.mxu3 %v564_v43 }
  0x9a   :  { %v1108_v46 = vpop.f32.mrf.mxu3  ;;  %v434_v48 = vadd.f32 %v1098_v36, %v433_v45 }
  0x9b   :  { %v1110_v47 = vpop.f32.mrf.mxu0 }
  0x9c   :  { %v548_v55 = vmax.f32 %v434_v48, 0.0 }
  0x9d   :  { %v420_v8 = vpop.f32.mrf.mxu1 }
  0x9e   :  { %v421_v18 = vadd.f32 %v1098_v36, %v420_v8 }
  0xa0   :  { %v543_v26 = vmax.f32 %v421_v18, 0.0 }
  0xa1   :  { %v435_v49 = vpop.f32.mrf.mxu2 }
  0xa2   :  { %v436_v50 = vadd.f32 %v1098_v36, %v435_v49  ;;  %v1117_v52 = vpop.f32.mrf.mxu3 }
  0xa3   :  { %v1119_v53 = vpop.f32.mrf.mxu0 }
  0xa4   :  { %v549_v56 = vmax.f32 %v436_v50, 0.0 }
  0xa5   :  { %v423_v12 = vpop.f32.mrf.mxu1 }
  0xa6   :  { %843 = vmatmul.msk.bf16.gmra.mxu0 %vm248_vm1, %v875_v51  ;;  %609 = vmatpush.msrb.mxu2 %v549_v56  ;;  %v424_v16 = vadd.f32 %v1098_v36, %v423_v12 }
  0xa8   :  { %610 = vmatpush.msrb.mxu2 %v548_v55  ;;  %v544_v21 = vmax.f32 %v424_v16, 0.0 }
  0xa9   :  { %v1124_v60 = vpop.f32.mrf.mxu2 }
  0xaa   :  { %611 = vmatpush.msrb.mxu2 %v547_v59  ;;  %v1126_v62 = vpop.f32.mrf.mxu3 }
  0xab   :  { %v1128_v63 = vpop.f32.mrf.mxu0 }
  0xac   :  { %612 = vmatpush.msrb.mxu2 %v546_v61 }
  0xad   :  { %v425_v17 = vpop.f32.mrf.mxu1 }
  0xae   :  { %v426_v19 = vadd.f32 %v1098_v36, %v425_v17 }
  0xb0   :  { %v545_v22 = vmax.f32 %v426_v19, 0.0 }
  0xb1   :  { %v1130_v1 = vpop.f32.mrf.mxu2 }
  0xb2   :  { %v1132_v2 = vpop.f32.mrf.mxu3  ;;  %613 = vmatpush.msrb.mxu2 %v545_v22 }
  0xb3   :  { %v1134_v3 = vpop.f32.mrf.mxu0 }
  0xb4   :  { %614 = vmatpush.msrb.mxu2 %v544_v21 }
  0xb6   :  { %615 = vmatpush.msrb.mxu2 %v543_v26 }
  0xb8   :  { %616 = vmatpush.msrb.mxu2 %v542_v29 }
  0xb9   :  { %v1136_v5 = vpop.f32.mrf.mxu2 }
  0xba   :  { %v1138_v6 = vpop.f32.mrf.mxu3  ;;  %617 = vmatpush.msrb.mxu2 %v541_v30 }
  0xbb   :  { %v1140_v7 = vpop.f32.mrf.mxu0 }
  0xbc   :  { %618 = vmatpush.msrb.mxu2 %v540_v32  ;;  %v376_v26 = vadd.f32 %v1098_v36, %v1140_v7  ;;  %v371_v32 = vadd.f32 %v1098_v36, %v1128_v63  ;;  %v364_v63 = vadd.f32 %v1098_v36, %v1104_v41  ;;  %v359_v41 = vadd.f32 %v1098_v36, %v1085_v31 }
  0xbe   :  { %v518_v31 = vmax.f32 %v359_v41, 0.0 }
  0xc1   :  { %v1142_v9 = vpop.f32.mrf.mxu2 }
  0xc2   :  { %v1144_v10 = vpop.f32.mrf.mxu3 }
  0xc3   :  { %v378_v11 = vpop.f32.mrf.mxu0 }
  0xc4   :  { %v379_v21 = vadd.f32 %v1098_v36, %v378_v11  ;;  %v525_v11 = vmax.f32 %v376_v26, 0.0 }
  0xc6   :  { %v526_v30 = vmax.f32 %v379_v21, 0.0 }
  0xc9   :  { %v1146_v13 = vpop.f32.mrf.mxu2 }
  0xca   :  { %v1148_v14 = vpop.f32.mrf.mxu3 }
  0xcb   :  { %v380_v15 = vpop.f32.mrf.mxu0 }
  0xcc   :  { %v381_v19 = vadd.f32 %v1098_v36, %v380_v15 }
  0xce   :  { %v527_v28 = vmax.f32 %v381_v19, 0.0 }
  0xd1   :  { %v1154_v23 = vpop.f32.mrf.mxu2 }
  0xd2   :  { %v1157_v25 = vpop.f32.mrf.mxu3 }
  0xd3   :  { %v383_v27 = vpop.f32.mrf.mxu0 }
  0xd4   :  { %v384_v17 = vadd.f32 %v1098_v36, %v383_v27  ;;  %v374_v27 = vadd.f32 %v1098_v36, %v1134_v3  ;;  %v523_v3 = vmax.f32 %v371_v32, 0.0 }
  0xd6   :  { %v528_v22 = vmax.f32 %v384_v17, 0.0 }
  0xd9   :  { %v1160_v33 = vpop.f32.mrf.mxu2 }
  0xda   :  { %v1162_v34 = vpop.f32.mrf.mxu3 }
  0xdb   :  { %v385_v37 = vpop.f32.mrf.mxu0 }
  0xdc   :  { %v386_v4 = vadd.f32 %v1098_v36, %v385_v37  ;;  %v369_v37 = vadd.f32 %v1098_v36, %v1119_v53 }
  0xde   :  { %v529_v20 = vmax.f32 %v386_v4, 0.0 }
  0xe1   :  { %v1164_v38 = vpop.f32.mrf.mxu2 }
  0xe2   :  { %v1166_v39 = vpop.f32.mrf.mxu3 }
  0xe3   :  { %v388_v40 = vpop.f32.mrf.mxu0 }
  0xe4   :  { %v389_v59 = vadd.f32 %v1098_v36, %v388_v40  ;;  %v524_v40 = vmax.f32 %v374_v27, 0.0 }
  0xe6   :  { %v530_v18 = vmax.f32 %v389_v59, 0.0  ;;  %v361_v59 = vadd.f32 %v1098_v36, %v1093_v35 }
  0xe8   :  { %v519_v19 = vmax.f32 %v361_v59, 0.0 }
  0xe9   :  { %v1168_v42 = vpop.f32.mrf.mxu2 }
  0xea   :  { %v1170_v43 = vpop.f32.mrf.mxu3  ;;  %v459_v35 = vadd.f32 %v1098_v36, %v1168_v42  ;;  %v1229_v42 = vld [vmem:[%s1302_s3] sm:$0xff] }
  0xeb   :  { %v390_v44 = vpop.f32.mrf.mxu0 }
  0xec   :  { %v391_v57 = vadd.f32 %v1098_v36, %v390_v44  ;;  %v558_v27 = vmax.f32 %v459_v35, 0.0 }
  0xee   :  { %v531_v8 = vmax.f32 %v391_v57, 0.0 }
  0xf1   :  { %v1172_v45 = vpop.f32.mrf.mxu2 }
  0xf2   :  { %v1174_v48 = vpop.f32.mrf.mxu3  ;;  %v461_v17 = vadd.f32 %v1098_v36, %v1172_v45  ;;  %v456_v45 = vadd.f32 %v1098_v36, %v1164_v38 }
  0xf3   :  { %v393_v49 = vpop.f32.mrf.mxu0  ;;  %v506_v32 = vadd.f32 %v1098_v36, %v1174_v48  ;;  %v501_v48 = vadd.f32 %v1098_v36, %v1166_v39  ;;  %v441_v39 = vadd.f32 %v1098_v36, %v1130_v1 }
  0xf4   :  { %v394_v55 = vadd.f32 %v1098_v36, %v393_v49  ;;  %v366_v49 = vadd.f32 %v1098_v36, %v1110_v47 }
  0xf5   :  { %v551_v1 = vmax.f32 %v441_v39, 0.0 }
  0xf6   :  { %v532_v61 = vmax.f32 %v394_v55, 0.0 }
  0xf9   :  { %v463_v50 = vpop.f32.mrf.mxu2 }
  0xfa   :  { %v1176_v51 = vpop.f32.mrf.mxu3  ;;  %v464_v47 = vadd.f32 %v1098_v36, %v463_v50 }
  0xfb   :  { %v395_v54 = vpop.f32.mrf.mxu0  ;;  %v509_v38 = vadd.f32 %v1098_v36, %v1176_v51  ;;  %v504_v51 = vadd.f32 %v1098_v36, %v1170_v43  ;;  %v444_v43 = vadd.f32 %v1098_v36, %v1136_v5  ;;  %v439_v5 = vadd.f32 %v1098_v36, %v1124_v60 }
  0xfc   :  { %v396_v56 = vadd.f32 %v1098_v36, %v395_v54  ;;  %v560_v50 = vmax.f32 %v464_v47, 0.0 }
  0xfd   :  { %v550_v60 = vmax.f32 %v439_v5, 0.0 }
  0xfe   :  { %v533_v58 = vmax.f32 %v396_v56, 0.0  ;;  %v522_v56 = vmax.f32 %v369_v37, 0.0 }
 0x100   :  { %586 = vmatpush.msrb.mxu1 %v533_v58 }
 0x101   :  { %v465_v0 = vpop.f32.mrf.mxu2 }
 0x102   :  { %587 = vmatpush.msrb.mxu1 %v532_v61  ;;  %v1183_v12 = vpop.f32.mrf.mxu3  ;;  %v466_v53 = vadd.f32 %v1098_v36, %v465_v0  ;;  %v521_v61 = vmax.f32 %v366_v49, 0.0  ;;  %v577_v49 = vmax.f32 %v506_v32, 0.0 }
 0x103   :  { %v1185_v16 = vpop.f32.mrf.mxu0 }
 0x104   :  { %588 = vmatpush.msrb.mxu1 %v531_v8  ;;  %v520_v8 = vmax.f32 %v364_v63, 0.0  ;;  %v561_v0 = vmax.f32 %v466_v53, 0.0  ;;  %v575_v53 = vmax.f32 %v501_v48, 0.0 }
 0x106   :  { %589 = vmatpush.msrb.mxu1 %v530_v18 }
 0x108   :  { %590 = vmatpush.msrb.mxu1 %v529_v20 }
 0x109   :  { %v468_v24 = vpop.f32.mrf.mxu2 }
 0x10a   :  { %591 = vmatpush.msrb.mxu1 %v528_v22  ;;  %v513_v15 = vpop.f32.mrf.mxu3  ;;  %v469_v7 = vadd.f32 %v1098_v36, %v468_v24  ;;  %v559_v22 = vmax.f32 %v461_v17, 0.0  ;;  %v511_v24 = vadd.f32 %v1098_v36, %v1183_v12  ;;  %v451_v12 = vadd.f32 %v1098_v36, %v1154_v23 }
 0x10b   :  { %v1192_v29 = vpop.f32.mrf.mxu0  ;;  %v514_v20 = vadd.f32 %v1098_v36, %v513_v15  ;;  %v557_v15 = vmax.f32 %v456_v45, 0.0  ;;  %v446_v23 = vadd.f32 %v1098_v36, %v1142_v9  ;;  %v499_v9 = vadd.f32 %v1098_v36, %v1162_v34 }
 0x10c   :  { %592 = vmatpush.msrb.mxu1 %v527_v28  ;;  %v562_v57 = vmax.f32 %v469_v7, 0.0  ;;  %v454_v28 = vadd.f32 %v1098_v36, %v1160_v33  ;;  %v449_v33 = vadd.f32 %v1098_v36, %v1146_v13  ;;  %v1251_v13 = vld [vmem:[%s1302_s3 + $0x10] sm:$0xff]  ;;  %v494_v34 = vadd.f32 %v1098_v36, %v1148_v14 }
 0x10d   :  { %v553_v63 = vmax.f32 %v446_v23, 0.0  ;;  %v489_v14 = vadd.f32 %v1098_v36, %v1138_v6  ;;  %v401_v35 = vadd.f32 %v1098_v36, %v1192_v29  ;;  %v484_v6 = vadd.f32 %v1098_v36, %v1126_v62 }
 0x10e   :  { %593 = vmatpush.msrb.mxu1 %v526_v30  ;;  %v580_v30 = vmax.f32 %v514_v20, 0.0  ;;  %v556_v37 = vmax.f32 %v454_v28, 0.0  ;;  %v572_v17 = vmax.f32 %v494_v34, 0.0  ;;  %v479_v29 = vadd.f32 %v1098_v36, %v1108_v46 }
 0x10f   :  { %v570_v20 = vmax.f32 %v489_v14, 0.0  ;;  %v535_v45 = vmax.f32 %v401_v35, 0.0 }
 0x110   :  { %594 = vmatpush.msrb.mxu1 %v525_v11  ;;  %v579_v11 = vmax.f32 %v511_v24, 0.0 }
 0x111   :  { %v470_v44 = vpop.f32.mrf.mxu2 }
 0x112   :  { %v471_v54 = vadd.f32 %v1098_v36, %v470_v44  ;;  %595 = vmatpush.msrb.mxu1 %v524_v40  ;;  %v515_v4 = vpop.f32.mrf.mxu3  ;;  %v578_v40 = vmax.f32 %v509_v38, 0.0  ;;  %v555_v44 = vmax.f32 %v451_v12, 0.0 }
 0x113   :  { %v1206_v55 = vpop.f32.mrf.mxu0  ;;  %v516_v18 = vadd.f32 %v1098_v36, %v515_v4 }
 0x114   :  { %v563_v58 = vmax.f32 %v471_v54, 0.0  ;;  %596 = vmatpush.msrb.mxu1 %v523_v3  ;;  %v554_v3 = vmax.f32 %v449_v33, 0.0  ;;  %v576_v54 = vmax.f32 %v504_v51, 0.0 }
 0x115   :  { %v581_v26 = vmax.f32 %v516_v18, 0.0 }
 0x116   :  { %597 = vmatpush.msrb.mxu1 %v522_v56  ;;  %638 = vmatpush.msrb.mxu3 %v563_v58  ;;  %v496_v56 = vadd.f32 %v1098_v36, %v1157_v25  ;;  %v574_v58 = vmax.f32 %v499_v9, 0.0  ;;  %v491_v25 = vadd.f32 %v1098_v36, %v1144_v10  ;;  %v486_v10 = vadd.f32 %v1098_v36, %v1132_v2 }
 0x117   :  { %v481_v2 = vadd.f32 %v1098_v36, %v1117_v52  ;;  %v566_v52 = vmax.f32 %v479_v29, 0.0 }
 0x118   :  { %598 = vmatpush.msrb.mxu1 %v521_v61  ;;  %639 = vmatpush.msrb.mxu3 %v562_v57  ;;  %v552_v57 = vmax.f32 %v444_v43, 0.0  ;;  %v573_v4 = vmax.f32 %v496_v56, 0.0 }
 0x119   :  { %v567_v24 = vmax.f32 %v481_v2, 0.0 }
 0x11a   :  { %599 = vmatpush.msrb.mxu1 %v520_v8  ;;  %640 = vmatpush.msrb.mxu3 %v561_v0  ;;  %v404_v0 = vadd.f32 %v1098_v36, %v1206_v55  ;;  %v399_v55 = vadd.f32 %v1098_v36, %v1185_v16  ;;  %v583_v16 = vld [vmem:[%s1302_s3 + $0x8] sm:$0xff] }
 0x11b   :  { %v1220_v21 = vpop.f32.mrf.mxu0 }
 0x11c   :  { %600 = vmatpush.msrb.mxu1 %v519_v19  ;;  %641 = vmatpush.msrb.mxu3 %v560_v50  ;;  %v406_v41 = vadd.f32 %v1098_v36, %v1220_v21  ;;  %v571_v19 = vmax.f32 %v491_v25, 0.0  ;;  %v536_v21 = vmax.f32 %v404_v0, 0.0  ;;  %v534_v62 = vmax.f32 %v399_v55, 0.0 }
 0x11e   :  { %601 = vmatpush.msrb.mxu1 %v518_v31  ;;  %642 = vmatpush.msrb.mxu3 %v559_v22  ;;  %v537_v50 = vmax.f32 %v406_v41, 0.0  ;;  %v569_v31 = vmax.f32 %v486_v10, 0.0  ;;  %v568_v22 = vmax.f32 %v484_v6, 0.0 }
 0x11f   :  { %602 = vmatmul.f32.vlgmr.msrb.gmra.mxu1 %v1229_v42 }
 0x120   :  { %659 = vmatpush.msra.mxu1 %v581_v26  ;;  %643 = vmatpush.msrb.mxu3 %v558_v27 }
 0x122   :  { %660 = vmatpush.msra.mxu1 %v580_v30  ;;  %644 = vmatpush.msrb.mxu3 %v557_v15 }
 0x123   :  { %v408_v7 = vpop.f32.mrf.mxu0 }
 0x124   :  { %661 = vmatpush.msra.mxu1 %v579_v11  ;;  %645 = vmatpush.msrb.mxu3 %v556_v37  ;;  %v409_v61 = vadd.f32 %v1098_v36, %v408_v7 }
 0x126   :  { %662 = vmatpush.msra.mxu1 %v578_v40  ;;  %646 = vmatpush.msrb.mxu3 %v555_v44  ;;  %v538_v18 = vmax.f32 %v409_v61, 0.0 }
 0x127   :  { %605 = vmatmul.f32.gmra.mxu1 %v1251_v13 }
 0x128   :  { %663 = vmatpush.msra.mxu1 %v577_v49  ;;  %647 = vmatpush.msrb.mxu3 %v554_v3 }
 0x12a   :  { %664 = vmatpush.msra.mxu1 %v576_v54  ;;  %648 = vmatpush.msrb.mxu3 %v553_v63 }
 0x12b   :  { %v410_v59 = vpop.f32.mrf.mxu0 }
 0x12c   :  { %665 = vmatpush.msra.mxu1 %v575_v53  ;;  %v411_v47 = vadd.f32 %v1098_v36, %v410_v59  ;;  %649 = vmatpush.msrb.mxu3 %v552_v57  ;;  %v585_v36 = vld [vmem:[%s1302_s3 + $0x18] sm:$0xff]  ;;  %s941_s3 = smov 64  }
 0x12e   :  { %666 = vmatpush.msra.mxu1 %v574_v58  ;;  %v539_v8 = vmax.f32 %v411_v47, 0.0  ;;  %650 = vmatpush.msrb.mxu3 %v551_v1 }
 0x130   :  { %667 = vmatpush.msra.mxu1 %v573_v4  ;;  %619 = vmatpush.msrb.mxu2 %v539_v8 }
 0x131   :  { %651 = vmatpush.msrb.mxu3 %v550_v60 }
 0x132   :  { %668 = vmatpush.msra.mxu1 %v572_v17  ;;  %652 = vmatmul.f32.vlgmr.msrb.gmra.mxu3 %v1229_v42 }
 0x133   :  { %620 = vmatpush.msrb.mxu2 %v538_v18 }
 0x134   :  { %669 = vmatpush.msra.mxu1 %v571_v19 }
 0x135   :  { %621 = vmatpush.msrb.mxu2 %v537_v50 }
 0x136   :  { %670 = vmatpush.msra.mxu1 %v570_v20 }
 0x137   :  { %622 = vmatpush.msrb.mxu2 %v536_v21 }
 0x138   :  { %671 = vmatpush.msra.mxu1 %v569_v31 }
 0x139   :  { %623 = vmatpush.msrb.mxu2 %v535_v45 }
 0x13a   :  { %672 = vmatpush.msra.mxu1 %v568_v22  ;;  %655 = vmatmul.f32.gmra.mxu3 %v1251_v13 }
 0x13b   :  { %624 = vmatpush.msrb.mxu2 %v534_v62 }
 0x13c   :  { %673 = vmatpush.msra.mxu1 %v567_v24  ;;  %625 = vmatmul.f32.vlgmr.msrb.gmra.mxu2 %v583_v16 }
 0x13e   :  { %674 = vmatpush.msra.mxu1 %v566_v52 }
 0x13f   :  { %675 = vmatmul.f32.vlgmr.msra.gmra.mxu1 %v583_v16 }
 0x144   :  { %628 = vmatmul.f32.gmra.mxu2 %v585_v36 }
 0x147   :  { %678 = vmatmul.f32.gmra.mxu1 %v585_v36 }
 0x19c   :  { %v603_v46 = vpop.f32.mrf.mxu1 }
 0x1a4   :  { %v606_v26 = vpop.f32.mrf.mxu1 }
 0x1b5   :  { %v653_v42 = vpop.f32.mrf.mxu3 }
 0x1bc   :  { %v676_v28 = vpop.f32.mrf.mxu1 }
 0x1bd   :  { %v656_v38 = vpop.f32.mrf.mxu3  ;;  %v677_v12 = vadd.f32 %v676_v28, %v653_v42 }
 0x1bf   :  { %v626_v27 = vpop.f32.mrf.mxu2 }
 0x1c0   :  { %v627_v33 = vadd.f32 %v626_v27, %v603_v46 }
 0x1c4   :  { %v679_v30 = vpop.f32.mrf.mxu1 }
 0x1c5   :  { %v680_v15 = vadd.f32 %v679_v30, %v656_v38 }
 0x1c7   :  { %v629_v32 = vpop.f32.mrf.mxu2  ;;  %v905_v11 = vpack.c.bf16 %v680_v15, %v677_v12 }
 0x1c8   :  { %v630_v37 = vadd.f32 %v629_v32, %v606_v26 }
 0x1c9   :  { %906 = vst [vmem:[#allocation2 + $0x8] sm:$0xff] %v905_v11  }
 0x1ca   :  { %v900_v51 = vpack.c.bf16 %v630_v37, %v627_v33 }
 0x1cc   :  { %901 = vst [vmem:[#allocation2] sm:$0xff] %v900_v51  }
 0x1cd   :  { %699 = dma.vmem_to_hbm [thread:$0]  %s692_s9, 256, %s694_s12, [#allocation3], %s941_s3, %s941_s3, %s942_s13  }
 0x1ce   :  { %938 = dma.done.wait [#allocation3], 256  }
 0x1cf   :  { %939 = vsyncadd [#allocation3], 4294967040 }
 0x1d0   :  { %704 = vsyncpa [#allocation3], 1 }

</bundles_post_ra>
